<compile_context>
chip_gen: v5e
topology: v5e:2x2
jax: 0.10.0
libtpu: 0.0.40
codegen_flags: <defaults>
</compile_context>

<pallas_src>
import functools
import math

import jax
import jax.numpy as jnp
from jax import lax
from jax.experimental import pallas as pl
from jax.experimental.pallas import tpu as pltpu


# Explicit scoped-VMEM ceiling; fits v7x's 64 MiB physical VMEM and is ample for
# v5e/v6e.  Tile caps below are also sized so (x,w,acc,out) double-buffered tiles
# stay well under this.
VMEM_LIMIT_BYTES = 48 * 1024 * 1024


def _pick_tile(dim, cap, mult):
    """Largest tile <= cap that is either the full dim or a multiple of `mult`
    that evenly divides `dim`; falls back to the full dim."""
    if dim <= cap:
        return dim
    t = (cap // mult) * mult
    while t >= mult:
        if dim % t == 0:
            return t
        t -= mult
    return dim


def _apply_activation(y, activation):
    if activation == "gelu":
        # TODO(synk): HF BERT uses exact (erf) GELU; tanh approximation used for
        # robust TPU lowering (numerically ~identical).
        c = 0.7978845608028654  # sqrt(2/pi)
        return 0.5 * y * (1.0 + jnp.tanh(c * (y + 0.044715 * y * y * y)))
    if activation == "tanh":
        return jnp.tanh(y)
    if activation == "sigmoid":
        return 1.0 / (1.0 + jnp.exp(-y))
    return y


# ----------------------------------------------------------------------------
# Tiled linear (+ optional activation epilogue)
# ----------------------------------------------------------------------------

def _linear_kernel(x_ref, w_ref, b_ref, o_ref, acc_ref, *, activation):
    k = pl.program_id(2)

    @pl.when(k == 0)
    def _():
        acc_ref[...] = jnp.zeros_like(acc_ref)

    acc_ref[...] += jnp.dot(x_ref[...].astype(jnp.bfloat16), w_ref[...],
                            preferred_element_type=jnp.float32)

    @pl.when(k == pl.num_programs(2) - 1)
    def _():
        y = acc_ref[...] + b_ref[...]
        o_ref[...] = _apply_activation(y, activation)


def linear(x, w, b, activation=None, *, tm_cap=512, tn_cap=512, tk_cap=512):
    """y = act(x @ w + b);  x:(M,K) f32, w:(K,N) bf16, b:(N,) f32 -> (M,N) f32."""
    M, K = x.shape
    N = w.shape[1]
    tm = _pick_tile(M, tm_cap, 8)
    tn = _pick_tile(N, tn_cap, 128)
    tk = _pick_tile(K, tk_cap, 128)
    grid = (M // tm, N // tn, K // tk)
    kernel = functools.partial(_linear_kernel, activation=activation)
    return pl.pallas_call(
        kernel,
        out_shape=jax.ShapeDtypeStruct((M, N), jnp.float32),
        grid=grid,
        in_specs=[
            pl.BlockSpec((tm, tk), lambda i, j, k: (i, k)),
            pl.BlockSpec((tk, tn), lambda i, j, k: (k, j)),
            pl.BlockSpec((1, tn), lambda i, j, k: (0, j)),
        ],
        out_specs=pl.BlockSpec((tm, tn), lambda i, j, k: (i, j)),
        scratch_shapes=[pltpu.VMEM((tm, tn), jnp.float32)],
        compiler_params=pltpu.CompilerParams(
            dimension_semantics=("parallel", "parallel", "arbitrary"),
            vmem_limit_bytes=VMEM_LIMIT_BYTES),
    )(x, w, b.reshape(1, N))


# ----------------------------------------------------------------------------
# Linear + bias + residual add + LayerNorm fused (wo / wf epilogue)
# ----------------------------------------------------------------------------

def _linear_add_ln_kernel(x_ref, w_ref, b_ref, r_ref, g_ref, be_ref, o_ref,
                          acc_ref, *, eps):
    k = pl.program_id(1)

    @pl.when(k == 0)
    def _():
        acc_ref[...] = jnp.zeros_like(acc_ref)

    acc_ref[...] += jnp.dot(x_ref[...].astype(jnp.bfloat16), w_ref[...],
                            preferred_element_type=jnp.float32)

    @pl.when(k == pl.num_programs(1) - 1)
    def _():
        h = acc_ref[...] + b_ref[...] + r_ref[...]
        mean = jnp.mean(h, axis=-1, keepdims=True)
        var = jnp.mean((h - mean) * (h - mean), axis=-1, keepdims=True)
        o_ref[...] = (h - mean) * lax.rsqrt(var + eps) * g_ref[...] + be_ref[...]


def linear_add_layernorm(x, w, b, residual, gamma, beta, eps=1e-12,
                         *, tm_cap=512, tk_cap=512):
    """LayerNorm(x @ w + b + residual) over the last dim (kept whole for LN)."""
    M, K = x.shape
    N = w.shape[1]
    tm = _pick_tile(M, tm_cap, 8)
    tk = _pick_tile(K, tk_cap, 128)
    grid = (M // tm, K // tk)
    kernel = functools.partial(_linear_add_ln_kernel, eps=eps)
    return pl.pallas_call(
        kernel,
        out_shape=jax.ShapeDtypeStruct((M, N), jnp.float32),
        grid=grid,
        in_specs=[
            pl.BlockSpec((tm, tk), lambda i, k: (i, k)),
            pl.BlockSpec((tk, N), lambda i, k: (k, 0)),
            pl.BlockSpec((1, N), lambda i, k: (0, 0)),
            pl.BlockSpec((tm, N), lambda i, k: (i, 0)),   # residual
            pl.BlockSpec((1, N), lambda i, k: (0, 0)),    # gamma
            pl.BlockSpec((1, N), lambda i, k: (0, 0)),    # beta
        ],
        out_specs=pl.BlockSpec((tm, N), lambda i, k: (i, 0)),
        scratch_shapes=[pltpu.VMEM((tm, N), jnp.float32)],
        compiler_params=pltpu.CompilerParams(
            dimension_semantics=("parallel", "arbitrary"),
            vmem_limit_bytes=VMEM_LIMIT_BYTES),
    )(x, w, b.reshape(1, N), residual, gamma.reshape(1, N), beta.reshape(1, N))


# ----------------------------------------------------------------------------
# Plain LayerNorm (no residual) — embedding LN
# ----------------------------------------------------------------------------

def _ln_kernel(x_ref, g_ref, b_ref, o_ref, *, eps):
    h = x_ref[...]
    mean = jnp.mean(h, axis=-1, keepdims=True)
    var = jnp.mean((h - mean) * (h - mean), axis=-1, keepdims=True)
    o_ref[...] = (h - mean) * lax.rsqrt(var + eps) * g_ref[...] + b_ref[...]


def layernorm(x, gamma, beta, eps=1e-12, *, tm_cap=1024):
    M, H = x.shape
    tm = _pick_tile(M, tm_cap, 8)
    kernel = functools.partial(_ln_kernel, eps=eps)
    return pl.pallas_call(
        kernel,
        out_shape=jax.ShapeDtypeStruct((M, H), jnp.float32),
        grid=(M // tm,),
        in_specs=[
            pl.BlockSpec((tm, H), lambda i: (i, 0)),
            pl.BlockSpec((1, H), lambda i: (0, 0)),
            pl.BlockSpec((1, H), lambda i: (0, 0)),
        ],
        out_specs=pl.BlockSpec((tm, H), lambda i: (i, 0)),
        compiler_params=pltpu.CompilerParams(
            dimension_semantics=("parallel",),
            vmem_limit_bytes=VMEM_LIMIT_BYTES),
    )(x, gamma.reshape(1, H), beta.reshape(1, H))


# ----------------------------------------------------------------------------
# Attention: all heads of one batch item per grid step, no head transposes
# ----------------------------------------------------------------------------

def _attention_kernel(qkv_ref, m_ref, o_ref, *, nh, dh, scale):
    qkv = qkv_ref[0]                      # (S, 3H) f32
    bias = m_ref[0]                       # (1, S) additive mask bias
    H = nh * dh
    ctx_parts = []
    for h in range(nh):
        # scale folded into Q before the QK matmul
        q = (qkv[:, h * dh:(h + 1) * dh] * scale).astype(jnp.bfloat16)
        k = qkv[:, H + h * dh:H + (h + 1) * dh].astype(jnp.bfloat16)
        v = qkv[:, 2 * H + h * dh:2 * H + (h + 1) * dh].astype(jnp.bfloat16)
        # contract the head dims directly (no materialized K transpose)
        s = lax.dot_general(q, k, (((1,), (1,)), ((), ())),
                            preferred_element_type=jnp.float32)        # (S,S)
        s = s + bias
        s = s - jnp.max(s, axis=-1, keepdims=True)
        p = jnp.exp(s)
        p = p * pl.reciprocal(jnp.sum(p, axis=-1, keepdims=True), approx=True)
        ctx_parts.append(jnp.dot(p.astype(jnp.bfloat16), v,
                                 preferred_element_type=jnp.float32))  # (S,dh)
    # single lane-dense store of all heads
    o_ref[0] = jnp.concatenate(ctx_parts, axis=-1)


def attention(qkv, mask_bias, nh, dh, scale):
    """qkv:(B,S,3H) f32, mask_bias:(B,1,S) f32 -> (B,S,H) f32."""
    B, S, threeH = qkv.shape
    H = threeH // 3
    kernel = functools.partial(_attention_kernel, nh=nh, dh=dh, scale=scale)
    return pl.pallas_call(
        kernel,
        out_shape=jax.ShapeDtypeStruct((B, S, H), jnp.float32),
        grid=(B,),
        in_specs=[
            pl.BlockSpec((1, S, threeH), lambda b: (b, 0, 0)),
            pl.BlockSpec((1, 1, S), lambda b: (b, 0, 0)),
        ],
        out_specs=pl.BlockSpec((1, S, H), lambda b: (b, 0, 0)),
        compiler_params=pltpu.CompilerParams(
            dimension_semantics=("parallel",),
            vmem_limit_bytes=VMEM_LIMIT_BYTES),
    )(qkv, mask_bias)


# ----------------------------------------------------------------------------
# Fused pooler (dense+tanh on CLS) + classifier (Linear(H,1) + Sigmoid)
# ----------------------------------------------------------------------------

def _pool_cls_kernel(cls_ref, pw_ref, pb_ref, ow_ref, ob_ref, o_ref):
    pooled = jnp.tanh(
        jnp.dot(cls_ref[...].astype(jnp.bfloat16), pw_ref[...],
                preferred_element_type=jnp.float32) + pb_ref[...])
    logit = jnp.dot(pooled.astype(jnp.bfloat16), ow_ref[...],
                    preferred_element_type=jnp.float32) + ob_ref[...]
    o_ref[...] = 1.0 / (1.0 + jnp.exp(-logit))


def pooler_classifier(cls, pool_w, pool_b, out_w, out_b):
    B, H = cls.shape
    return pl.pallas_call(
        _pool_cls_kernel,
        out_shape=jax.ShapeDtypeStruct((B, 1), jnp.float32),
        grid=(1,),
        in_specs=[
            pl.BlockSpec((B, H), lambda i: (0, 0)),
            pl.BlockSpec((H, H), lambda i: (0, 0)),
            pl.BlockSpec((1, H), lambda i: (0, 0)),
            pl.BlockSpec((H, 1), lambda i: (0, 0)),
            pl.BlockSpec((1, 1), lambda i: (0, 0)),
        ],
        out_specs=pl.BlockSpec((B, 1), lambda i: (0, 0)),
        compiler_params=pltpu.CompilerParams(
            vmem_limit_bytes=VMEM_LIMIT_BYTES),
    )(cls, pool_w, pool_b.reshape(1, H), out_w, out_b.reshape(1, 1))


# ----------------------------------------------------------------------------
# Model definition (parameter init + forward glue)
# ----------------------------------------------------------------------------

CONFIG = dict(
    vocab=64,
    max_pos=16,
    type_vocab=2,
    hidden=32,          # small-scale stand-in for d_hidden=768
    heads=4,
    intermediate=64,
    layers=2,
)


def init_params(key, cfg):
    H, I = cfg["hidden"], cfg["intermediate"]
    V, P, T, L = cfg["vocab"], cfg["max_pos"], cfg["type_vocab"], cfg["layers"]
    keys = iter(jax.random.split(key, 64))

    def dense(fan_in, fan_out):
        # matmul weights stored in bf16 (MXU input dtype); biases / LN stay f32
        return (jax.random.normal(next(keys), (fan_in, fan_out), jnp.float32)
                * 0.02).astype(jnp.bfloat16)

    params = {
        "word_emb": jax.random.normal(next(keys), (V, H), jnp.float32) * 0.02,
        "pos_emb": jax.random.normal(next(keys), (P, H), jnp.float32) * 0.02,
        "type_emb": jax.random.normal(next(keys), (T, H), jnp.float32) * 0.02,
        "emb_ln_g": jnp.ones((H,), jnp.float32),
        "emb_ln_b": jnp.zeros((H,), jnp.float32),
        "pool_w": dense(H, H),
        "pool_b": jnp.zeros((H,), jnp.float32),
        "out_w": dense(H, 1),               # nn.Linear(d_hidden, 1)
        "out_b": jnp.zeros((1,), jnp.float32),
        "layers": [],
    }
    for _ in range(L):
        params["layers"].append({
            # fused Q|K|V projection: single (H, 3H) weight / (3H,) bias
            "wqkv": dense(H, 3 * H), "bqkv": jnp.zeros((3 * H,), jnp.float32),
            "wo": dense(H, H), "bo": jnp.zeros((H,), jnp.float32),
            "ln1_g": jnp.ones((H,), jnp.float32), "ln1_b": jnp.zeros((H,), jnp.float32),
            "wi": dense(H, I), "bi": jnp.zeros((I,), jnp.float32),
            "wf": dense(I, H), "bf": jnp.zeros((H,), jnp.float32),
            "ln2_g": jnp.ones((H,), jnp.float32), "ln2_b": jnp.zeros((H,), jnp.float32),
        })
    return params


def bert_classifier_forward(params, input_ids, attn_mask, cfg=CONFIG):
    """Mirrors BertClassifierModel.forward: BERT pooler_output -> Linear -> Sigmoid -> squeeze(-1)."""
    B, S = input_ids.shape
    H = cfg["hidden"]
    nh = cfg["heads"]
    dh = H // nh
    scale = 1.0 / math.sqrt(dh)

    # --- embeddings (gather lookup is glue; LayerNorm runs as a Pallas kernel) ---
    word = params["word_emb"][input_ids]                       # (B,S,H)
    pos = params["pos_emb"][jnp.arange(S)][None, :, :]         # (1,S,H)
    tok = params["type_emb"][0][None, None, :]                 # (1,1,H), token_type_ids=0
    emb = (word + pos + tok).reshape(B * S, H)
    h = layernorm(emb, params["emb_ln_g"], params["emb_ln_b"])

    # additive attention-mask bias, shared over heads inside the attention kernel
    mask_bias = ((1.0 - attn_mask.astype(jnp.float32)) * -1e9).reshape(B, 1, S)

    # --- transformer encoder layers ---
    for lyr in params["layers"]:
        # fused Q|K|V projection in one tiled matmul
        qkv = linear(h, lyr["wqkv"], lyr["bqkv"])                          # (B*S, 3H)
        ctx = attention(qkv.reshape(B, S, 3 * H), mask_bias, nh, dh, scale)  # (B,S,H)
        # output projection + residual add + LayerNorm fused into one kernel
        h = linear_add_layernorm(ctx.reshape(B * S, H), lyr["wo"], lyr["bo"],
                                 h, lyr["ln1_g"], lyr["ln1_b"])
        # FFN: intermediate (GELU) matmul, then output matmul fused with add+LN
        ffn = linear(h, lyr["wi"], lyr["bi"], activation="gelu")
        h = linear_add_layernorm(ffn, lyr["wf"], lyr["bf"],
                                 h, lyr["ln2_g"], lyr["ln2_b"])

    # --- pooler on [CLS] + classifier head, fused in one kernel ---
    cls = h.reshape(B, S, H)[:, 0, :]                                      # (B,H)
    prob = pooler_classifier(cls, params["pool_w"], params["pool_b"],
                             params["out_w"], params["out_b"])             # (B,1)
    return prob.squeeze(-1)                                                # (B,)


# ----------------------------------------------------------------------------
# Driver
# ----------------------------------------------------------------------------

if __name__ == "__main__":
    key = jax.random.PRNGKey(0)
    p_key, id_key = jax.random.split(key)

    params = init_params(p_key, CONFIG)

    B, S = 2, 8
    input_ids = jax.random.randint(id_key, (B, S), 0, CONFIG["vocab"], dtype=jnp.int32)
    attn_mask = jnp.array([[1, 1, 1, 1, 1, 1, 1, 1],
                           [1, 1, 1, 1, 1, 1, 0, 0]], dtype=jnp.int32)

    out = bert_classifier_forward(params, input_ids, attn_mask)
    out = jax.block_until_ready(out)

    assert out.shape == (B,)
    assert bool(jnp.all(jnp.isfinite(out)))
    assert bool(jnp.all((out >= 0.0) & (out <= 1.0)))
    print("KERNEL_OK")
</pallas_src>

<mosaic_0001>
module attributes {stable_mosaic.version = 11 : i64} {
  func.func @_ln_kernel(%arg0: i32, %arg1: memref<16x32xf32, #tpu.memory_space<vmem>>, %arg2: memref<1x32xf32, #tpu.memory_space<vmem>>, %arg3: memref<1x32xf32, #tpu.memory_space<vmem>>, %arg4: memref<16x32xf32, #tpu.memory_space<vmem>>) attributes {dimension_semantics = [#tpu.dimension_semantics<parallel>], iteration_bounds = array<i64: 1>, scalar_prefetch = 0 : i64, scratch_operands = 0 : i64, tpu.core_type = #tpu.core_type<tc>, window_params = [{transform_indices = @transform_0, window_bounds = array<i64: 16, 32>}, {pipeline_mode = #tpu.pipeline_mode<synchronous>, transform_indices = @transform_1, window_bounds = array<i64: 1, 32>}, {pipeline_mode = #tpu.pipeline_mode<synchronous>, transform_indices = @transform_2, window_bounds = array<i64: 1, 32>}, {transform_indices = @transform_3, window_bounds = array<i64: 16, 32>}]} {
    %c0 = arith.constant 0 : index
    %c0_0 = arith.constant 0 : index
    %0 = vector.load %arg1[%c0, %c0_0] : memref<16x32xf32, #tpu.memory_space<vmem>>, vector<16x32xf32>
    %cst = arith.constant dense<0.000000e+00> : vector<16xf32>
    %1 = vector.multi_reduction <add>, %0, %cst [1] : vector<16x32xf32> to vector<16xf32>
    %2 = vector.shape_cast %1 : vector<16xf32> to vector<16x1xf32>
    %cst_1 = arith.constant 3.200000e+01 : f32
    %3 = vector.broadcast %cst_1 : f32 to vector<16x1xf32>
    %4 = arith.divf %2, %3 : vector<16x1xf32>
    %5 = vector.broadcast %4 : vector<16x1xf32> to vector<16x32xf32>
    %6 = arith.subf %0, %5 : vector<16x32xf32>
    %7 = vector.broadcast %4 : vector<16x1xf32> to vector<16x32xf32>
    %8 = arith.subf %0, %7 : vector<16x32xf32>
    %9 = arith.mulf %6, %8 : vector<16x32xf32>
    %cst_2 = arith.constant dense<0.000000e+00> : vector<16xf32>
    %10 = vector.multi_reduction <add>, %9, %cst_2 [1] : vector<16x32xf32> to vector<16xf32>
    %11 = vector.shape_cast %10 : vector<16xf32> to vector<16x1xf32>
    %cst_3 = arith.constant 3.200000e+01 : f32
    %12 = vector.broadcast %cst_3 : f32 to vector<16x1xf32>
    %13 = arith.divf %11, %12 : vector<16x1xf32>
    %14 = vector.broadcast %4 : vector<16x1xf32> to vector<16x32xf32>
    %15 = arith.subf %0, %14 : vector<16x32xf32>
    %cst_4 = arith.constant 9.99999996E-13 : f32
    %16 = vector.broadcast %cst_4 : f32 to vector<16x1xf32>
    %17 = arith.addf %13, %16 : vector<16x1xf32>
    %18 = math.rsqrt %17 : vector<16x1xf32>
    %19 = vector.broadcast %18 : vector<16x1xf32> to vector<16x32xf32>
    %20 = arith.mulf %15, %19 : vector<16x32xf32>
    %c0_5 = arith.constant 0 : index
    %c0_6 = arith.constant 0 : index
    %21 = vector.load %arg2[%c0_5, %c0_6] : memref<1x32xf32, #tpu.memory_space<vmem>>, vector<1x32xf32>
    %22 = vector.broadcast %21 : vector<1x32xf32> to vector<16x32xf32>
    %23 = arith.mulf %20, %22 : vector<16x32xf32>
    %c0_7 = arith.constant 0 : index
    %c0_8 = arith.constant 0 : index
    %24 = vector.load %arg3[%c0_7, %c0_8] : memref<1x32xf32, #tpu.memory_space<vmem>>, vector<1x32xf32>
    %25 = vector.broadcast %24 : vector<1x32xf32> to vector<16x32xf32>
    %26 = arith.addf %23, %25 : vector<16x32xf32>
    %c0_9 = arith.constant 0 : index
    %c0_10 = arith.constant 0 : index
    %27 = vector.load %arg4[%c0_9, %c0_10] : memref<16x32xf32, #tpu.memory_space<vmem>>, vector<16x32xf32>
    tpu.vector_store %arg4[%c0_9, %c0_10], %26 {strides = array<i32>} : memref<16x32xf32, #tpu.memory_space<vmem>>, vector<16x32xf32>,
    return
  }
  func.func @transform_0(%arg0: i32) -> (i32, i32) {
    %c0_i32 = arith.constant 0 : i32
    %c0_i32_0 = arith.constant 0 : i32
    return %arg0, %c0_i32 : i32, i32
  }
  func.func @transform_1(%arg0: i32) -> (i32, i32) {
    %c0_i32 = arith.constant 0 : i32
    %c0_i32_0 = arith.constant 0 : i32
    %c0_i32_1 = arith.constant 0 : i32
    return %c0_i32, %c0_i32_0 : i32, i32
  }
  func.func @transform_2(%arg0: i32) -> (i32, i32) {
    %c0_i32 = arith.constant 0 : i32
    %c0_i32_0 = arith.constant 0 : i32
    %c0_i32_1 = arith.constant 0 : i32
    return %c0_i32, %c0_i32_0 : i32, i32
  }
  func.func @transform_3(%arg0: i32) -> (i32, i32) {
    %c0_i32 = arith.constant 0 : i32
    %c0_i32_0 = arith.constant 0 : i32
    return %arg0, %c0_i32 : i32, i32
  }
}

</mosaic_0001>

<bundles_post_ra>
// kernel: tpu_custom_call.1
= control target key start
LH: loop header
LB: loop body
LE: loop exit
PB: predicated region body
PF: predicated region fallthrough
CT: control target
= control target key end

     0   :  { %8 = vsyncpa [#allocation3], 0  ;;  %s275_s0 = inlined_call_operand.hbm [shape: f32[16,32], index: 0, kind: input, shape index: {}]   ;;  %s276_s1 = inlined_call_operand.hbm [shape: f32[1,32], index: 1, kind: input, shape index: {}]   ;;  %s277_s2 = inlined_call_operand.vmem [shape: f32[1,32], index: 2, kind: input, shape index: {}]   ;;  %s278_s3 = inlined_call_operand.hbm [shape: f32[16,32], index: 3, kind: output, shape index: {}]  }
   0x1   :  { %9 = vsyncpa [#allocation6], 0 }
   0x2   :  { %10 = vsyncpa [#allocation4], 0  ;;  %s15_s14 = sshll.u32 %s275_s0, 4  ;;  %s225_s15 = smov [#allocation2]   ;;  %s16_s14 = int_to_ptr.hbm [resolvable:$true] %s15_s14 }
   0x3   :  { %s17_s16 = sshll.u32 %s225_s15, 4  ;;  %s29_s19 = sshll.u32 %s276_s1, 4  ;;  %s18_s16 = int_to_ptr.vmem [resolvable:$true] %s17_s16  ;;  %s30_s19 = int_to_ptr.hbm [resolvable:$true] %s29_s19 }
   0x4   :  { %s226_s20 = smov 128   ;;  %s227_s21 = smov 8  }
   0x5   :  { %23 = dma.hbm_to_vmem [thread:$0]  %s16_s14, 256, %s18_s16, [#allocation3], %s226_s20, %s226_s20, %s227_s21  }
   0x6   :  { %s228_s22 = smov [#allocation5]  }
   0x7   :  { %s31_s23 = sshll.u32 %s228_s22, 4  ;;  %s32_s23 = int_to_ptr.vmem [resolvable:$true] %s31_s23 }
   0x8   :  { %34 = dma.hbm_to_vmem [thread:$0]  %s30_s19, 16, %s32_s23, [#allocation6]  }
   0x9   :  { %219 = dma.done.wait [#allocation3], 256  }
   0xa   :  { %220 = vsyncadd [#allocation3], 4294967040 }
   0xb   :  { %221 = dma.done.wait [#allocation6], 16  }
   0xc   :  { %222 = vsyncadd [#allocation6], 4294967280  ;;  %vm47_vm0 = vcmask 261120   ;;  %v45_v0 = vld [vmem:[#allocation2] sm:$0xff]  ;;  %v46_v2 = vld [vmem:[#allocation2 + $0x8] sm:$0xff]  ;;  %v229_v4 = vmov 32.0  }
   0xd   :  { %v48_v1 = vsel %vm47_vm0, %v45_v0, 0.0  ;;  %v51_v3 = vsel %vm47_vm0, %v46_v2, 0.0  ;;  %141 = vrcp.f32 %v229_v4  ;;  %v139_v35 = vld [vmem:[#allocation5] ss:$0 sm:$0xff]  ;;  %v140_v39 = vld [vmem:[%s277_s2] ss:$0 sm:$0xff] }
   0xe   :  { %49 = vadd.xlane.f32.xlu0 %v48_v1  ;;  %s230_s24 = smov [#allocation7]   ;;  %s119_s28 = sshll.u32 %s278_s3, 4  ;;  %s120_s28 = int_to_ptr.hbm [resolvable:$true] %s119_s28 }
   0xf   :  { %s117_s25 = sshll.u32 %s230_s24, 4  ;;  %s118_s25 = int_to_ptr.vmem [resolvable:$true] %s117_s25 }
  0x13   :  { %v142_v5 = vpop.eup %141 }
  0x14   :  { %v55_v6 = vmul.f32 32.0, %v142_v5  ;;  %vm59_vm1 = vweird.f32 %v142_v5 }
  0x16   :  { %52 = vadd.xlane.f32.xlu0 %v51_v3  ;;  %v56_v7 = vsub.f32 1.0, %v55_v6 }
  0x18   :  { %v57_v8 = vmul.f32 %v142_v5, %v56_v7 }
  0x1a   :  { %v58_v9 = vadd.f32 %v142_v5, %v57_v8 }
  0x1c   :  { %v60_v10 = vsel %vm59_vm1, %v142_v5, %v58_v9 }
  0x81   :  { %v50_v11 = vpop.xlane.xlu0 %49 }
  0x82   :  { %v61_v12 = vmul.f32 %v60_v10, %v50_v11 }
  0x84   :  { %v63_v13 = vsub.f32 %v45_v0, %v61_v12 }
  0x86   :  { %v65_v14 = vmul.f32 %v63_v13, %v63_v13 }
  0x88   :  { %v67_v15 = vsel %vm47_vm0, %v65_v14, 0.0 }
  0x89   :  { %68 = vadd.xlane.f32.xlu1 %v67_v15  ;;  %v53_v16 = vpop.xlane.xlu0 %52 }
  0x8a   :  { %v62_v17 = vmul.f32 %v60_v10, %v53_v16 }
  0x8c   :  { %v64_v18 = vsub.f32 %v46_v2, %v62_v17 }
  0x8e   :  { %v66_v19 = vmul.f32 %v64_v18, %v64_v18 }
  0x90   :  { %v70_v20 = vsel %vm47_vm0, %v66_v19, 0.0 }
  0x91   :  { %71 = vadd.xlane.f32.xlu1 %v70_v20 }
  0xfc   :  { %v69_v21 = vpop.xlane.xlu1 %68 }
  0xfd   :  { %v73_v22 = vmul.f32 %v69_v21, %v60_v10 }
  0xff   :  { %v75_v23 = vadd.f32 1e-12, %v73_v22 }
 0x101   :  { %143 = vrsqrt.f32 %v75_v23  ;;  %vm83_vm3 = vweird.f32 %v75_v23 }
 0x104   :  { %v72_v24 = vpop.xlane.xlu1 %71 }
 0x105   :  { %v74_v25 = vmul.f32 %v72_v24, %v60_v10 }
 0x107   :  { %v144_v26 = vpop.eup %143  ;;  %v76_v27 = vadd.f32 1e-12, %v74_v25 }
 0x108   :  { %v78_v28 = vmul.f32 %v144_v26, %v75_v23  ;;  %vm84_vm2 = vweird.f32 %v144_v26 }
 0x109   :  { %145 = vrsqrt.f32 %v76_v27  ;;  %vm85_vm4 = vmor %vm83_vm3, %vm84_vm2  ;;  %vm93_vm6 = vweird.f32 %v76_v27 }
 0x10a   :  { %v79_v29 = vmul.f32 %v144_v26, %v78_v28 }
 0x10c   :  { %v80_v30 = vmul.f32 0.5, %v79_v29 }
 0x10e   :  { %v81_v31 = vsub.f32 1.5, %v80_v30 }
 0x10f   :  { %v146_v32 = vpop.eup %145 }
 0x110   :  { %v82_v33 = vmul.f32 %v144_v26, %v81_v31  ;;  %v88_v34 = vmul.f32 %v146_v32, %v76_v27  ;;  %vm94_vm5 = vweird.f32 %v146_v32 }
 0x111   :  { %vm95_vm7 = vmor %vm93_vm6, %vm94_vm5 }
 0x112   :  { %v86_v36 = vsel %vm85_vm4, %v144_v26, %v82_v33  ;;  %v89_v37 = vmul.f32 %v146_v32, %v88_v34 }
 0x113   :  { %v97_v38 = vmul.f32 %v86_v36, %v63_v13 }
 0x114   :  { %v90_v40 = vmul.f32 0.5, %v89_v37 }
 0x115   :  { %v103_v41 = vmul.f32 %v139_v35, %v97_v38 }
 0x116   :  { %v91_v42 = vsub.f32 1.5, %v90_v40 }
 0x117   :  { %v109_v43 = vadd.f32 %v140_v39, %v103_v41 }
 0x118   :  { %v92_v44 = vmul.f32 %v146_v32, %v91_v42 }
 0x119   :  { %111 = vst.msk [vmem:[#allocation7] sm:$0xff] %vm47_vm0, %v109_v43 }
 0x11a   :  { %v96_v45 = vsel %vm95_vm7, %v146_v32, %v92_v44 }
 0x11b   :  { %v98_v46 = vmul.f32 %v96_v45, %v64_v18 }
 0x11d   :  { %v104_v47 = vmul.f32 %v139_v35, %v98_v46 }
 0x11f   :  { %v110_v48 = vadd.f32 %v140_v39, %v104_v47 }
 0x121   :  { %112 = vst.msk [vmem:[#allocation7 + $0x8] sm:$0xff] %vm47_vm0, %v110_v48 }
 0x122   :  { %125 = dma.vmem_to_hbm [thread:$0]  %s118_s25, 256, %s120_s28, [#allocation4], %s226_s20, %s226_s20, %s227_s21  }
 0x123   :  { %223 = dma.done.wait [#allocation4], 256  }
 0x124   :  { %224 = vsyncadd [#allocation4], 4294967040 }
 0x125   :  { %130 = vsyncpa [#allocation3], 1 }
 0x126   :  { %131 = vsyncpa [#allocation6], 1 }
 0x127   :  { %132 = vsyncpa [#allocation4], 1 }

</bundles_post_ra>
